<compile_context>
chip_gen: v5e
topology: v5e:2x2
jax: 0.10.0
libtpu: 0.0.40
codegen_flags: <defaults>
</compile_context>

<pallas_src>
import functools

import jax
import jax.numpy as jnp
from jax import lax
from jax.experimental import pallas as pl
from jax.experimental.pallas import tpu as pltpu

EPS = 1e-5          # nn.BatchNorm2d default eps
LANE = 128
SUBLANE = 16        # bf16-friendly sublane multiple


# ----------------------------------------------------------------------------
# small helpers
# ----------------------------------------------------------------------------
def _round_up(v, m):
    return (v + m - 1) // m * m


def _pad_rows(a, rows):
    return jnp.pad(a, ((0, rows - a.shape[0]), (0, 0)))


def _pad_cols(a, cols):
    return jnp.pad(a, ((0, 0), (0, cols - a.shape[1])))


def _pad_vec(v, n):
    return jnp.pad(v.astype(jnp.float32), (0, n - v.shape[0]))


def _vmem_caps():
    """(tile-sizing budget, vmem_limit_bytes) derived per TPU generation.

    v5e/v6e have 128 MiB VMEM per TensorCore, v7x only 64 MiB, so budgets are
    derived from the chip instead of hard-coding one number.  Falls back to
    v7x-safe values if the query is unavailable."""
    phys = 64 << 20
    try:
        info = pltpu.get_tpu_info()
        phys = int(getattr(info, "vmem_capacity_bytes", phys) or phys)
    except Exception:
        pass
    budget = min(phys // 2, 40 << 20)                      # streaming + weights
    limit = min((phys * 3) // 4, budget + (16 << 20))      # + compiler headroom
    return budget, limit


def _pick_tile_m(M, Kp, Cp, budget_bytes):
    """Largest M tile whose pass-1/pass-2 footprint (resident single-buffered
    weight, double-buffered streaming blocks, stats/scale/shift) fits the
    per-generation budget, capped so grid_m >= 2 (keeps both v7x cores busy)."""
    weight_bytes = Kp * Cp * 2                       # bf16, single-buffered
    fixed = weight_bytes + 8 * Cp * 4                # stats / scale / shift
    per_row_p1 = 2 * (Kp * 2 + Cp * 2)               # patches in + y out (bf16)
    per_row_p2 = 2 * (Cp * 2 + Cp * 2 + Cp * 4)      # y + residual in, f32 out
    per_row = max(per_row_p1, per_row_p2)
    tm = max(budget_bytes - fixed, 0) // per_row
    tm = max(SUBLANE, (int(tm) // SUBLANE) * SUBLANE)
    tm = min(tm, 1024)                                         # streaming plateau
    tm = min(tm, max(SUBLANE, _round_up((M + 1) // 2, SUBLANE)))  # grid_m >= 2
    return min(tm, _round_up(M, SUBLANE))


def _resident_weight_spec(Kp, Cp):
    # Constant-index operand: a single VMEM buffer suffices (saves Kp*Cp*2 B
    # of VMEM vs. default double buffering -> larger M tiles).
    try:
        return pl.BlockSpec((Kp, Cp), lambda i: (0, 0),
                            pipeline_mode=pl.Buffered(1))
    except TypeError:  # BlockSpec signature without pipeline_mode
        return pl.BlockSpec((Kp, Cp), lambda i: (0, 0))


# ----------------------------------------------------------------------------
# Pallas kernels
# ----------------------------------------------------------------------------
def _matmul_stats_kernel(p_ref, w_ref, y_ref, stats_ref, *, inv_rows):
    """pass 1: y = patches @ W (bf16 x bf16 -> f32 on the MXU), per-tile channel
    sum and second moment centered at the tile mean (robust variance partials);
    y is stored back as bf16 to halve HBM writeback / pass-2 read traffic."""
    y = jnp.dot(p_ref[...], w_ref[...], preferred_element_type=jnp.float32)
    s = jnp.sum(y, axis=0, keepdims=True)                    # [1, Cp] f32
    d = y - s * inv_rows                                     # centered at tile mean
    m2 = jnp.sum(d * d, axis=0, keepdims=True)               # [1, Cp] f32
    y_ref[...] = y.astype(y_ref.dtype)
    stats_ref[0, :, :] = jnp.concatenate([s, m2], axis=0)    # [2, Cp]


def _bn_act_kernel(y_ref, scale_ref, shift_ref, *rest, apply_relu, has_residual):
    """pass 2: y*scale + shift (+ residual) (+ ReLU), f32 math, cast on store."""
    if has_residual:
        r_ref, o_ref = rest
    else:
        (o_ref,) = rest
    y = y_ref[...].astype(jnp.float32) * scale_ref[...] + shift_ref[...]
    if has_residual:
        y = y + r_ref[...].astype(jnp.float32)
    if apply_relu:
        y = jnp.maximum(y, 0.0)
    o_ref[...] = y.astype(o_ref.dtype)


# ----------------------------------------------------------------------------
# fused conv (as matmul) + BatchNorm(batch stats) + optional residual + ReLU
# ----------------------------------------------------------------------------
def conv_bn_act(patches, w, gamma, beta, residual, *, true_m, tile_m,
                vmem_limit, apply_relu, out_dtype):
    """patches [Mp, Kp] bf16 (rows >= true_m and cols >= K are zero padding),
       w [Kp, Cp] bf16, gamma/beta [Cp] f32, residual [Mp, Cp] bf16 or None.
       Returns [Mp, Cp] in out_dtype.  BatchNorm uses training-mode stats."""
    Mp, Kp = patches.shape
    Cp = w.shape[1]
    grid_m = Mp // tile_m

    # ---- pass 1: tiled matmul, bf16 y writeback, per-tile BN partials ------
    p1_bytes = Mp * Kp * 2 + Kp * Cp * 2 + Mp * Cp * 2 + grid_m * 2 * Cp * 4
    kernel1 = functools.partial(_matmul_stats_kernel, inv_rows=1.0 / tile_m)
    y, stats = pl.pallas_call(
        kernel1,
        out_shape=(jax.ShapeDtypeStruct((Mp, Cp), jnp.bfloat16),
                   jax.ShapeDtypeStruct((grid_m, 2, Cp), jnp.float32)),
        grid=(grid_m,),
        in_specs=[
            pl.BlockSpec((tile_m, Kp), lambda i: (i, 0)),   # streamed patches
            _resident_weight_spec(Kp, Cp),                  # resident weights
        ],
        out_specs=(
            pl.BlockSpec((tile_m, Cp), lambda i: (i, 0)),
            pl.BlockSpec((1, 2, Cp), lambda i: (i, 0, 0)),
        ),
        compiler_params=pltpu.CompilerParams(
            dimension_semantics=("parallel",),
            vmem_limit_bytes=int(vmem_limit)),
        cost_estimate=pl.CostEstimate(
            flops=2 * Mp * Kp * Cp, transcendentals=0,
            bytes_accessed=int(p1_bytes)),
    )(patches, w)

    # ---- fold global BN (batch) stats into per-channel scale/shift ---------
    # Chan-style merge of per-tile (sum, centered-M2) partials.  Zero-padded
    # rows only exist in the last tile and are corrected for analytically.
    nv = jnp.clip(true_m - jnp.arange(grid_m) * tile_m, 1, tile_m)
    nv = nv.astype(jnp.float32).reshape(grid_m, 1)
    s_i, m2_i = stats[:, 0, :], stats[:, 1, :]
    mu_i = s_i / nv
    # correction factor is exactly 0 for full tiles (nv == tile_m)
    m2v_i = m2_i + s_i * s_i * ((nv - float(tile_m)) / (nv * float(tile_m)))
    mean = jnp.sum(s_i, axis=0) / float(true_m)
    m2 = jnp.sum(m2v_i + nv * jnp.square(mu_i - mean), axis=0)
    var = jnp.maximum(m2 / float(true_m), 0.0)
    scale = gamma * lax.rsqrt(var + EPS)
    shift = beta - mean * scale
    scale = scale.reshape(1, Cp)
    shift = shift.reshape(1, Cp)

    # ---- pass 2: normalize (+ residual) (+ ReLU), streamed -----------------
    has_residual = residual is not None
    kernel2 = functools.partial(_bn_act_kernel, apply_relu=apply_relu,
                                has_residual=has_residual)
    in_arrays = [y, scale, shift]
    in_specs = [
        pl.BlockSpec((tile_m, Cp), lambda i: (i, 0)),
        pl.BlockSpec((1, Cp), lambda i: (0, 0)),
        pl.BlockSpec((1, Cp), lambda i: (0, 0)),
    ]
    if has_residual:
        in_arrays.append(residual)
        in_specs.append(pl.BlockSpec((tile_m, Cp), lambda i: (i, 0)))

    out_itemsize = jnp.dtype(out_dtype).itemsize
    p2_bytes = Mp * Cp * 2 * (2 if has_residual else 1) \
        + 2 * Cp * 4 + Mp * Cp * out_itemsize
    out = pl.pallas_call(
        kernel2,
        out_shape=jax.ShapeDtypeStruct((Mp, Cp), out_dtype),
        grid=(grid_m,),
        in_specs=in_specs,
        out_specs=pl.BlockSpec((tile_m, Cp), lambda i: (i, 0)),
        compiler_params=pltpu.CompilerParams(
            dimension_semantics=("parallel",),
            vmem_limit_bytes=int(vmem_limit)),
        cost_estimate=pl.CostEstimate(
            flops=4 * Mp * Cp, transcendentals=0,
            bytes_accessed=int(p2_bytes)),
    )(*in_arrays)
    return out


# ----------------------------------------------------------------------------
# Glue: im2col + parameter reshaping (plain JAX)
# ----------------------------------------------------------------------------
def im2col_3x3(x_nhwc, stride):
    """x [N,H,W,C] -> patches [N*Ho*Wo, 9*C] (tap order ky, kx, cin), Ho, Wo."""
    N, H, W, C = x_nhwc.shape
    Ho = (H + 2 - 3) // stride + 1
    Wo = (W + 2 - 3) // stride + 1
    xp = jnp.pad(x_nhwc, ((0, 0), (1, 1), (1, 1), (0, 0)))
    cols = []
    for ky in range(3):
        for kx in range(3):
            cols.append(
                xp[:, ky:ky + (Ho - 1) * stride + 1:stride,
                      kx:kx + (Wo - 1) * stride + 1:stride, :])
    patches = jnp.concatenate(cols, axis=-1)  # [N, Ho, Wo, 9*C]
    return patches.reshape(N * Ho * Wo, 9 * C), Ho, Wo


def conv3x3_weight_to_matrix(w_oihw):
    """PyTorch [Cout, Cin, 3, 3] -> [9*Cin, Cout] matching im2col tap order."""
    return jnp.transpose(w_oihw, (2, 3, 1, 0)).reshape(-1, w_oihw.shape[0])


def basic_block_forward(x_nchw, w1_oihw, w2_oihw, wd_oihw,
                        g1, b1, g2, b2, gd, bd, *, inplanes, planes, stride):
    x = jnp.transpose(x_nchw, (0, 2, 3, 1)).astype(jnp.float32)   # NCHW -> NHWC
    N, H, W, _ = x.shape
    Ho = (H + 2 - 3) // stride + 1
    Wo = (W + 2 - 3) // stride + 1
    M = N * Ho * Wo
    Cp = _round_up(planes, LANE)

    # Contraction axes padded to lane multiples (unmasked loads; Cin >= 256
    # layers are already 256-aligned for the 2x256x256 MXUs on v6e/v7x).
    K1p = _round_up(9 * inplanes, LANE)
    K2p = _round_up(9 * planes, LANE)
    Kdp = _round_up(inplanes, LANE)

    budget, vmem_limit = _vmem_caps()
    tile_m = _pick_tile_m(M, max(K1p, K2p, Kdp), Cp, budget)
    Mp = _round_up(M, tile_m)

    # ---- weights / BN params: pad to (Kp, Cp), bf16 MXU operands -----------
    w1 = _pad_rows(_pad_cols(conv3x3_weight_to_matrix(w1_oihw), Cp), K1p)
    w2 = _pad_rows(_pad_cols(conv3x3_weight_to_matrix(w2_oihw), Cp), K2p)
    w1, w2 = w1.astype(jnp.bfloat16), w2.astype(jnp.bfloat16)
    g1p, b1p = _pad_vec(g1, Cp), _pad_vec(b1, Cp)
    g2p, b2p = _pad_vec(g2, Cp), _pad_vec(b2, Cp)

    xb = x.astype(jnp.bfloat16)

    # ---- residual / downsample path (kept in bf16: pass 2 is HBM-bound) ----
    if inplanes != planes:
        # 1x1 strided conv + BN (training-mode stats), no ReLU, no residual in.
        xs = xb[:, ::stride, ::stride, :]                    # (N, Ho, Wo, Cin)
        pd = _pad_rows(_pad_cols(xs.reshape(M, inplanes), Kdp), Mp)
        wd = _pad_rows(_pad_cols(jnp.transpose(wd_oihw[:, :, 0, 0], (1, 0)), Cp),
                       Kdp).astype(jnp.bfloat16)             # [Kdp, Cp]
        gdp, bdp = _pad_vec(gd, Cp), _pad_vec(bd, Cp)
        residual = conv_bn_act(pd, wd, gdp, bdp, None, true_m=M, tile_m=tile_m,
                               vmem_limit=vmem_limit, apply_relu=False,
                               out_dtype=jnp.bfloat16)
    else:
        # identity residual (PyTorch uses lambda x: x, which requires stride == 1
        # for the shapes to match).  bf16 copy only -- no f32 round-trip.
        assert stride == 1, "identity residual path requires stride == 1"
        residual = _pad_rows(_pad_cols(xb.reshape(N * H * W, planes), Cp), Mp)

    # ---- out = relu(bn1(conv1(x))) ------------------------------------------
    p1, _, _ = im2col_3x3(xb, stride)                        # bf16 [M, 9*Cin]
    p1 = _pad_rows(_pad_cols(p1, K1p), Mp)
    out1 = conv_bn_act(p1, w1, g1p, b1p, None, true_m=M, tile_m=tile_m,
                       vmem_limit=vmem_limit, apply_relu=True,
                       out_dtype=jnp.bfloat16)
    out1 = out1[:M, :planes].reshape(N, Ho, Wo, planes)      # bf16 activations

    # ---- out = relu(bn2(conv2(out)) + residual) -----------------------------
    p2, _, _ = im2col_3x3(out1, 1)                           # bf16 [M, 9*planes]
    p2 = _pad_rows(_pad_cols(p2, K2p), Mp)
    out2 = conv_bn_act(p2, w2, g2p, b2p, residual, true_m=M, tile_m=tile_m,
                       vmem_limit=vmem_limit, apply_relu=True,
                       out_dtype=jnp.float32)

    out = out2[:M, :planes].reshape(N, Ho, Wo, planes)
    return jnp.transpose(out, (0, 3, 1, 2))                  # back to NCHW


# ----------------------------------------------------------------------------
# Pure-JAX reference (for correctness checking only)
# ----------------------------------------------------------------------------
def _ref_bn(y, g, b):
    mean = y.mean(axis=(0, 2, 3), keepdims=True)
    var = jnp.square(y - mean).mean(axis=(0, 2, 3), keepdims=True)
    return (y - mean) * lax.rsqrt(var + EPS) * g.reshape(1, -1, 1, 1) \
        + b.reshape(1, -1, 1, 1)


def ref_forward(x, w1, w2, wd, g1, b1, g2, b2, gd, bd, *,
                inplanes, planes, stride, matmul_dtype=jnp.float32):
    # matmul_dtype=jnp.bfloat16 mimics the kernel's bf16 MXU operands.
    def conv(x_, w_, s, pad):
        x_ = x_.astype(matmul_dtype).astype(jnp.float32)
        w_ = w_.astype(matmul_dtype).astype(jnp.float32)
        return lax.conv_general_dilated(
            x_, w_, (s, s), ((pad, pad), (pad, pad)),
            dimension_numbers=("NCHW", "OIHW", "NCHW"))

    if inplanes != planes:
        residual = _ref_bn(conv(x, wd, stride, 0), gd, bd)
    else:
        residual = x
    out = jnp.maximum(_ref_bn(conv(x, w1, stride, 1), g1, b1), 0.0)
    out = _ref_bn(conv(out, w2, 1, 1), g2, b2)
    return jnp.maximum(out + residual, 0.0)


# ----------------------------------------------------------------------------
def _run_case(key, *, N, inplanes, planes, H, W, stride):
    kx, k1, k2, kd, kg = jax.random.split(key, 5)
    x = jax.random.normal(kx, (N, inplanes, H, W), jnp.float32)
    w1 = jax.random.normal(k1, (planes, inplanes, 3, 3), jnp.float32) * 0.1
    w2 = jax.random.normal(k2, (planes, planes, 3, 3), jnp.float32) * 0.1
    wd = jax.random.normal(kd, (planes, inplanes, 1, 1), jnp.float32) * 0.1
    kb = jax.random.split(kg, 6)
    g1 = 1.0 + 0.1 * jax.random.normal(kb[0], (planes,), jnp.float32)
    b1 = 0.1 * jax.random.normal(kb[1], (planes,), jnp.float32)
    g2 = 1.0 + 0.1 * jax.random.normal(kb[2], (planes,), jnp.float32)
    b2 = 0.1 * jax.random.normal(kb[3], (planes,), jnp.float32)
    gd = 1.0 + 0.1 * jax.random.normal(kb[4], (planes,), jnp.float32)
    bd = 0.1 * jax.random.normal(kb[5], (planes,), jnp.float32)

    fwd = jax.jit(functools.partial(basic_block_forward, inplanes=inplanes,
                                    planes=planes, stride=stride))
    out = jax.block_until_ready(fwd(x, w1, w2, wd, g1, b1, g2, b2, gd, bd))

    ref = ref_forward(x, w1, w2, wd, g1, b1, g2, b2, gd, bd,
                      inplanes=inplanes, planes=planes, stride=stride,
                      matmul_dtype=jnp.bfloat16)
    Ho = (H + 2 - 3) // stride + 1
    Wo = (W + 2 - 3) // stride + 1
    assert out.shape == ref.shape == (N, planes, Ho, Wo), (out.shape, ref.shape)
    err = float(jnp.max(jnp.abs(out - ref)))
    # Tolerance reflects the deliberate bf16 intermediates (y / residual / out1).
    assert jnp.allclose(out, ref, atol=3e-2, rtol=3e-2), err


if __name__ == "__main__":
    key = jax.random.PRNGKey(0)
    k_a, k_b = jax.random.split(key)
    # downsample branch: inplanes != planes, stride 2
    _run_case(k_a, N=2, inplanes=4, planes=8, H=16, W=16, stride=2)
    # identity-residual branch: inplanes == planes, stride 1
    _run_case(k_b, N=2, inplanes=8, planes=8, H=8, W=8, stride=1)
    print("KERNEL_OK")
</pallas_src>

<mosaic_0001>
module attributes {stable_mosaic.version = 11 : i64} {
  func.func @_matmul_stats_kernel(%arg0: i32, %arg1: memref<64x128xbf16, #tpu.memory_space<vmem>>, %arg2: memref<128x128xbf16, #tpu.memory_space<vmem>>, %arg3: memref<64x128xbf16, #tpu.memory_space<vmem>>, %arg4: memref<1x2x128xf32, #tpu.memory_space<vmem>>) attributes {dimension_semantics = [#tpu.dimension_semantics<parallel>], iteration_bounds = array<i64: 2>, scalar_prefetch = 0 : i64, scratch_operands = 0 : i64, tpu.core_type = #tpu.core_type<tc>, window_params = [{transform_indices = @transform_0, window_bounds = array<i64: 64, 128>}, {pipeline_mode = #tpu.pipeline_mode<synchronous>, transform_indices = @transform_1, window_bounds = array<i64: 128, 128>}, {transform_indices = @transform_2, window_bounds = array<i64: 64, 128>}, {transform_indices = @transform_3, window_bounds = array<i64: 1, 2, 128>}]} {
    %c0 = arith.constant 0 : index
    %c0_0 = arith.constant 0 : index
    %0 = vector.load %arg1[%c0, %c0_0] : memref<64x128xbf16, #tpu.memory_space<vmem>>, vector<64x128xbf16>
    %c0_1 = arith.constant 0 : index
    %c0_2 = arith.constant 0 : index
    %1 = vector.load %arg2[%c0_1, %c0_2] : memref<128x128xbf16, #tpu.memory_space<vmem>>, vector<128x128xbf16>
    %cst = arith.constant dense<0.000000e+00> : vector<64x128xf32>
    %2 = tpu.matmul %0, %1, %cst {dimension_numbers = #tpu.dot_dimension_numbers<[1], [0], [0], [1], [0, 0, 1, 1], [], []>} : vector<64x128xbf16>, vector<128x128xbf16>, vector<64x128xf32> -> vector<64x128xf32>
    %cst_3 = arith.constant dense<0.000000e+00> : vector<128xf32>
    %3 = vector.multi_reduction <add>, %2, %cst_3 [0] : vector<64x128xf32> to vector<128xf32>
    %4 = vector.shape_cast %3 : vector<128xf32> to vector<1x128xf32>
    %cst_4 = arith.constant 1.562500e-02 : f32
    %5 = vector.broadcast %cst_4 : f32 to vector<1x128xf32>
    %6 = arith.mulf %4, %5 : vector<1x128xf32>
    %7 = vector.broadcast %6 : vector<1x128xf32> to vector<64x128xf32>
    %8 = arith.subf %2, %7 : vector<64x128xf32>
    %9 = arith.mulf %8, %8 : vector<64x128xf32>
    %cst_5 = arith.constant dense<0.000000e+00> : vector<128xf32>
    %10 = vector.multi_reduction <add>, %9, %cst_5 [0] : vector<64x128xf32> to vector<128xf32>
    %11 = vector.shape_cast %10 : vector<128xf32> to vector<1x128xf32>
    %12 = arith.truncf %2 : vector<64x128xf32> to vector<64x128xbf16>
    %c0_6 = arith.constant 0 : index
    %c0_7 = arith.constant 0 : index
    %13 = vector.load %arg3[%c0_6, %c0_7] : memref<64x128xbf16, #tpu.memory_space<vmem>>, vector<64x128xbf16>
    tpu.vector_store %arg3[%c0_6, %c0_7], %12 {strides = array<i32>} : memref<64x128xbf16, #tpu.memory_space<vmem>>, vector<64x128xbf16>,
    %14 = tpu.concatenate %4, %11 in 0 : vector<1x128xf32>, vector<1x128xf32> -> vector<2x128xf32>
    %c0_8 = arith.constant 0 : index
    %c0_9 = arith.constant 0 : index
    %c0_10 = arith.constant 0 : index
    %15 = vector.load %arg4[%c0_8, %c0_9, %c0_10] : memref<1x2x128xf32, #tpu.memory_space<vmem>>, vector<1x2x128xf32>
    %16 = vector.shape_cast %15 : vector<1x2x128xf32> to vector<2x128xf32>
    %17 = vector.shape_cast %14 : vector<2x128xf32> to vector<1x2x128xf32>
    tpu.vector_store %arg4[%c0_8, %c0_9, %c0_10], %17 {strides = array<i32>} : memref<1x2x128xf32, #tpu.memory_space<vmem>>, vector<1x2x128xf32>,
    return
  }
  func.func @transform_0(%arg0: i32) -> (i32, i32) {
    %c0_i32 = arith.constant 0 : i32
    %c0_i32_0 = arith.constant 0 : i32
    return %arg0, %c0_i32 : i32, i32
  }
  func.func @transform_1(%arg0: i32) -> (i32, i32) {
    %c0_i32 = arith.constant 0 : i32
    %c0_i32_0 = arith.constant 0 : i32
    %c0_i32_1 = arith.constant 0 : i32
    return %c0_i32, %c0_i32_0 : i32, i32
  }
  func.func @transform_2(%arg0: i32) -> (i32, i32) {
    %c0_i32 = arith.constant 0 : i32
    %c0_i32_0 = arith.constant 0 : i32
    return %arg0, %c0_i32 : i32, i32
  }
  func.func @transform_3(%arg0: i32) -> (i32, i32, i32) {
    %c0_i32 = arith.constant 0 : i32
    %c0_i32_0 = arith.constant 0 : i32
    %c0_i32_1 = arith.constant 0 : i32
    return %arg0, %c0_i32, %c0_i32_0 : i32, i32, i32
  }
}

module attributes {stable_mosaic.version = 11 : i64} {
  func.func @_bn_act_kernel(%arg0: i32, %arg1: memref<64x128xbf16, #tpu.memory_space<vmem>>, %arg2: memref<1x128xf32, #tpu.memory_space<vmem>>, %arg3: memref<1x128xf32, #tpu.memory_space<vmem>>, %arg4: memref<64x128xbf16, #tpu.memory_space<vmem>>) attributes {dimension_semantics = [#tpu.dimension_semantics<parallel>], iteration_bounds = array<i64: 2>, scalar_prefetch = 0 : i64, scratch_operands = 0 : i64, tpu.core_type = #tpu.core_type<tc>, window_params = [{transform_indices = @transform_0, window_bounds = array<i64: 64, 128>}, {pipeline_mode = #tpu.pipeline_mode<synchronous>, transform_indices = @transform_1, window_bounds = array<i64: 1, 128>}, {pipeline_mode = #tpu.pipeline_mode<synchronous>, transform_indices = @transform_2, window_bounds = array<i64: 1, 128>}, {transform_indices = @transform_3, window_bounds = array<i64: 64, 128>}]} {
    %c0 = arith.constant 0 : index
    %c0_0 = arith.constant 0 : index
    %0 = vector.load %arg1[%c0, %c0_0] : memref<64x128xbf16, #tpu.memory_space<vmem>>, vector<64x128xbf16>
    %1 = arith.extf %0 : vector<64x128xbf16> to vector<64x128xf32>
    %c0_1 = arith.constant 0 : index
    %c0_2 = arith.constant 0 : index
    %2 = vector.load %arg2[%c0_1, %c0_2] : memref<1x128xf32, #tpu.memory_space<vmem>>, vector<1x128xf32>
    %3 = vector.broadcast %2 : vector<1x128xf32> to vector<64x128xf32>
    %4 = arith.mulf %1, %3 : vector<64x128xf32>
    %c0_3 = arith.constant 0 : index
    %c0_4 = arith.constant 0 : index
    %5 = vector.load %arg3[%c0_3, %c0_4] : memref<1x128xf32, #tpu.memory_space<vmem>>, vector<1x128xf32>
    %6 = vector.broadcast %5 : vector<1x128xf32> to vector<64x128xf32>
    %7 = arith.addf %4, %6 : vector<64x128xf32>
    %cst = arith.constant 0.000000e+00 : f32
    %8 = vector.broadcast %cst : f32 to vector<64x128xf32>
    %9 = arith.maximumf %7, %8 : vector<64x128xf32>
    %10 = arith.truncf %9 : vector<64x128xf32> to vector<64x128xbf16>
    %c0_5 = arith.constant 0 : index
    %c0_6 = arith.constant 0 : index
    %11 = vector.load %arg4[%c0_5, %c0_6] : memref<64x128xbf16, #tpu.memory_space<vmem>>, vector<64x128xbf16>
    tpu.vector_store %arg4[%c0_5, %c0_6], %10 {strides = array<i32>} : memref<64x128xbf16, #tpu.memory_space<vmem>>, vector<64x128xbf16>,
    return
  }
  func.func @transform_0(%arg0: i32) -> (i32, i32) {
    %c0_i32 = arith.constant 0 : i32
    %c0_i32_0 = arith.constant 0 : i32
    return %arg0, %c0_i32 : i32, i32
  }
  func.func @transform_1(%arg0: i32) -> (i32, i32) {
    %c0_i32 = arith.constant 0 : i32
    %c0_i32_0 = arith.constant 0 : i32
    %c0_i32_1 = arith.constant 0 : i32
    return %c0_i32, %c0_i32_0 : i32, i32
  }
  func.func @transform_2(%arg0: i32) -> (i32, i32) {
    %c0_i32 = arith.constant 0 : i32
    %c0_i32_0 = arith.constant 0 : i32
    %c0_i32_1 = arith.constant 0 : i32
    return %c0_i32, %c0_i32_0 : i32, i32
  }
  func.func @transform_3(%arg0: i32) -> (i32, i32) {
    %c0_i32 = arith.constant 0 : i32
    %c0_i32_0 = arith.constant 0 : i32
    return %arg0, %c0_i32 : i32, i32
  }
}

module attributes {stable_mosaic.version = 11 : i64} {
  func.func @_bn_act_kernel(%arg0: i32, %arg1: memref<64x128xbf16, #tpu.memory_space<vmem>>, %arg2: memref<1x128xf32, #tpu.memory_space<vmem>>, %arg3: memref<1x128xf32, #tpu.memory_space<vmem>>, %arg4: memref<64x128xbf16, #tpu.memory_space<vmem>>) attributes {dimension_semantics = [#tpu.dimension_semantics<parallel>], iteration_bounds = array<i64: 2>, scalar_prefetch = 0 : i64, scratch_operands = 0 : i64, tpu.core_type = #tpu.core_type<tc>, window_params = [{transform_indices = @transform_0, window_bounds = array<i64: 64, 128>}, {pipeline_mode = #tpu.pipeline_mode<synchronous>, transform_indices = @transform_1, window_bounds = array<i64: 1, 128>}, {pipeline_mode = #tpu.pipeline_mode<synchronous>, transform_indices = @transform_2, window_bounds = array<i64: 1, 128>}, {transform_indices = @transform_3, window_bounds = array<i64: 64, 128>}]} {
    %c0 = arith.constant 0 : index
    %c0_0 = arith.constant 0 : index
    %0 = vector.load %arg1[%c0, %c0_0] : memref<64x128xbf16, #tpu.memory_space<vmem>>, vector<64x128xbf16>
    %1 = arith.extf %0 : vector<64x128xbf16> to vector<64x128xf32>
    %c0_1 = arith.constant 0 : index
    %c0_2 = arith.constant 0 : index
    %2 = vector.load %arg2[%c0_1, %c0_2] : memref<1x128xf32, #tpu.memory_space<vmem>>, vector<1x128xf32>
    %3 = vector.broadcast %2 : vector<1x128xf32> to vector<64x128xf32>
    %4 = arith.mulf %1, %3 : vector<64x128xf32>
    %c0_3 = arith.constant 0 : index
    %c0_4 = arith.constant 0 : index
    %5 = vector.load %arg3[%c0_3, %c0_4] : memref<1x128xf32, #tpu.memory_space<vmem>>, vector<1x128xf32>
    %6 = vector.broadcast %5 : vector<1x128xf32> to vector<64x128xf32>
    %7 = arith.addf %4, %6 : vector<64x128xf32>
    %8 = arith.truncf %7 : vector<64x128xf32> to vector<64x128xbf16>
    %c0_5 = arith.constant 0 : index
    %c0_6 = arith.constant 0 : index
    %9 = vector.load %arg4[%c0_5, %c0_6] : memref<64x128xbf16, #tpu.memory_space<vmem>>, vector<64x128xbf16>
    tpu.vector_store %arg4[%c0_5, %c0_6], %8 {strides = array<i32>} : memref<64x128xbf16, #tpu.memory_space<vmem>>, vector<64x128xbf16>,
    return
  }
  func.func @transform_0(%arg0: i32) -> (i32, i32) {
    %c0_i32 = arith.constant 0 : i32
    %c0_i32_0 = arith.constant 0 : i32
    return %arg0, %c0_i32 : i32, i32
  }
  func.func @transform_1(%arg0: i32) -> (i32, i32) {
    %c0_i32 = arith.constant 0 : i32
    %c0_i32_0 = arith.constant 0 : i32
    %c0_i32_1 = arith.constant 0 : i32
    return %c0_i32, %c0_i32_0 : i32, i32
  }
  func.func @transform_2(%arg0: i32) -> (i32, i32) {
    %c0_i32 = arith.constant 0 : i32
    %c0_i32_0 = arith.constant 0 : i32
    %c0_i32_1 = arith.constant 0 : i32
    return %c0_i32, %c0_i32_0 : i32, i32
  }
  func.func @transform_3(%arg0: i32) -> (i32, i32) {
    %c0_i32 = arith.constant 0 : i32
    %c0_i32_0 = arith.constant 0 : i32
    return %arg0, %c0_i32 : i32, i32
  }
}

module attributes {stable_mosaic.version = 11 : i64} {
  func.func @_bn_act_kernel(%arg0: i32, %arg1: memref<64x128xbf16, #tpu.memory_space<vmem>>, %arg2: memref<1x128xf32, #tpu.memory_space<vmem>>, %arg3: memref<1x128xf32, #tpu.memory_space<vmem>>, %arg4: memref<64x128xbf16, #tpu.memory_space<vmem>>, %arg5: memref<64x128xf32, #tpu.memory_space<vmem>>) attributes {dimension_semantics = [#tpu.dimension_semantics<parallel>], iteration_bounds = array<i64: 2>, scalar_prefetch = 0 : i64, scratch_operands = 0 : i64, tpu.core_type = #tpu.core_type<tc>, window_params = [{transform_indices = @transform_0, window_bounds = array<i64: 64, 128>}, {pipeline_mode = #tpu.pipeline_mode<synchronous>, transform_indices = @transform_1, window_bounds = array<i64: 1, 128>}, {pipeline_mode = #tpu.pipeline_mode<synchronous>, transform_indices = @transform_2, window_bounds = array<i64: 1, 128>}, {transform_indices = @transform_3, window_bounds = array<i64: 64, 128>}, {transform_indices = @transform_4, window_bounds = array<i64: 64, 128>}]} {
    %c0 = arith.constant 0 : index
    %c0_0 = arith.constant 0 : index
    %0 = vector.load %arg1[%c0, %c0_0] : memref<64x128xbf16, #tpu.memory_space<vmem>>, vector<64x128xbf16>
    %1 = arith.extf %0 : vector<64x128xbf16> to vector<64x128xf32>
    %c0_1 = arith.constant 0 : index
    %c0_2 = arith.constant 0 : index
    %2 = vector.load %arg2[%c0_1, %c0_2] : memref<1x128xf32, #tpu.memory_space<vmem>>, vector<1x128xf32>
    %3 = vector.broadcast %2 : vector<1x128xf32> to vector<64x128xf32>
    %4 = arith.mulf %1, %3 : vector<64x128xf32>
    %c0_3 = arith.constant 0 : index
    %c0_4 = arith.constant 0 : index
    %5 = vector.load %arg3[%c0_3, %c0_4] : memref<1x128xf32, #tpu.memory_space<vmem>>, vector<1x128xf32>
    %6 = vector.broadcast %5 : vector<1x128xf32> to vector<64x128xf32>
    %7 = arith.addf %4, %6 : vector<64x128xf32>
    %c0_5 = arith.constant 0 : index
    %c0_6 = arith.constant 0 : index
    %8 = vector.load %arg4[%c0_5, %c0_6] : memref<64x128xbf16, #tpu.memory_space<vmem>>, vector<64x128xbf16>
    %9 = arith.extf %8 : vector<64x128xbf16> to vector<64x128xf32>
    %10 = arith.addf %7, %9 : vector<64x128xf32>
    %cst = arith.constant 0.000000e+00 : f32
    %11 = vector.broadcast %cst : f32 to vector<64x128xf32>
    %12 = arith.maximumf %10, %11 : vector<64x128xf32>
    %c0_7 = arith.constant 0 : index
    %c0_8 = arith.constant 0 : index
    %13 = vector.load %arg5[%c0_7, %c0_8] : memref<64x128xf32, #tpu.memory_space<vmem>>, vector<64x128xf32>
    tpu.vector_store %arg5[%c0_7, %c0_8], %12 {strides = array<i32>} : memref<64x128xf32, #tpu.memory_space<vmem>>, vector<64x128xf32>,
    return
  }
  func.func @transform_0(%arg0: i32) -> (i32, i32) {
    %c0_i32 = arith.constant 0 : i32
    %c0_i32_0 = arith.constant 0 : i32
    return %arg0, %c0_i32 : i32, i32
  }
  func.func @transform_1(%arg0: i32) -> (i32, i32) {
    %c0_i32 = arith.constant 0 : i32
    %c0_i32_0 = arith.constant 0 : i32
    %c0_i32_1 = arith.constant 0 : i32
    return %c0_i32, %c0_i32_0 : i32, i32
  }
  func.func @transform_2(%arg0: i32) -> (i32, i32) {
    %c0_i32 = arith.constant 0 : i32
    %c0_i32_0 = arith.constant 0 : i32
    %c0_i32_1 = arith.constant 0 : i32
    return %c0_i32, %c0_i32_0 : i32, i32
  }
  func.func @transform_3(%arg0: i32) -> (i32, i32) {
    %c0_i32 = arith.constant 0 : i32
    %c0_i32_0 = arith.constant 0 : i32
    return %arg0, %c0_i32 : i32, i32
  }
  func.func @transform_4(%arg0: i32) -> (i32, i32) {
    %c0_i32 = arith.constant 0 : i32
    %c0_i32_0 = arith.constant 0 : i32
    return %arg0, %c0_i32 : i32, i32
  }
}

</mosaic_0001>

<bundles_post_ra>
// kernel: basic_block_forward.9
= control target key start
LH: loop header
LB: loop body
LE: loop exit
PB: predicated region body
PF: predicated region fallthrough
CT: control target
= control target key end

     0   :  { %s385_s12 = smov 0   ;;  %s415_s0 = inlined_call_operand.vmem [shape: bf16[128,128], index: 0, kind: input, shape index: {}]   ;;  %s416_s1 = inlined_call_operand.vmem [shape: f32[1,128], index: 1, kind: input, shape index: {}]   ;;  %s417_s2 = inlined_call_operand.vmem [shape: f32[1,128], index: 2, kind: input, shape index: {}]   ;;  %s418_s3 = inlined_call_operand.vmem [shape: bf16[128,128], index: 3, kind: output, shape index: {}]  }
   0x1 LB: > { %s294_s13 = sadd.s32 4294967295, %s363_s12   ;;  %p298_p0 = scmp.ge.s32.totalorder %s363_s12, 1  ;;  %s363_s12 = sphi %s385_s12, %s13_s12  }
   0x2   : > { %p138_p1 = scmp.lt.s32.totalorder %s363_s12, 3 }
   0x4   : > { %p139_p2 = pnand %p298_p0, %p138_p1 }
   0x5   : > { %s299_s14 = sshll.u32 (!%p139_p2), %s294_s13, 3 }
   0x6   : > { %142 = sbr.rel (%p139_p2) target bundleno = 29 (0x1d), region = 32  ;;  %p163_p3 = scmp.lt.s32.totalorder (!%p139_p2), %s299_s14, 15 }
   0xb   : > { %s420_s14 = smov (!%p163_p3, %s299_s14), 15  ;;  %v355_v0 = vld [vmem:[%s416_s1] ss:$0 sm:$0xff] }
   0xc   : > { %s300_s15 = sshll.u32 %s420_s14, 2  ;;  %v356_v6 = vld [vmem:[%s417_s2] ss:$0 sm:$0xff] }
   0xd   : > { %s166_s18 = scalar_lea.vmem %s415_s0, %s300_s15  ;;  %s172_s25 = scalar_lea.vmem %s418_s3, %s300_s15 }
   0xe   : > { %v306_v1 = vld [vmem:[%s166_s18] sm:$0xff]   ;;  %v341_v2 = vld [vmem:[%s166_s18 + $0x8] sm:$0xff]   ;;  %v342_v3 = vld [vmem:[%s166_s18 + $0x10] sm:$0xff]  }
   0xf   : > { %v307_v4 = vunpack.c.l.bf16 %v306_v1  ;;  %v308_v5 = vunpack.c.h.bf16 %v306_v1  ;;  %v311_v7 = vunpack.c.l.bf16 %v341_v2  ;;  %v312_v8 = vunpack.c.h.bf16 %v341_v2  ;;  %v343_v9 = vld [vmem:[%s166_s18 + $0x18] sm:$0xff]  }
  0x10   : > { %v315_v10 = vunpack.c.l.bf16 %v342_v3  ;;  %v316_v11 = vunpack.c.h.bf16 %v342_v3  ;;  %v319_v12 = vunpack.c.l.bf16 %v343_v9  ;;  %v320_v13 = vunpack.c.h.bf16 %v343_v9 }
  0x11   : > { %v194_v14 = vmul.f32 %v355_v0, %v307_v4  ;;  %v195_v15 = vmul.f32 %v355_v0, %v308_v5  ;;  %v196_v16 = vmul.f32 %v355_v0, %v311_v7  ;;  %v197_v17 = vmul.f32 %v355_v0, %v312_v8 }
  0x12   : > { %v198_v18 = vmul.f32 %v355_v0, %v315_v10  ;;  %v199_v19 = vmul.f32 %v355_v0, %v316_v11  ;;  %v200_v20 = vmul.f32 %v355_v0, %v319_v12  ;;  %v201_v21 = vmul.f32 %v355_v0, %v320_v13 }
  0x13   : > { %v206_v22 = vadd.f32 %v356_v6, %v194_v14  ;;  %v207_v23 = vadd.f32 %v356_v6, %v195_v15  ;;  %v208_v24 = vadd.f32 %v356_v6, %v196_v16  ;;  %v209_v25 = vadd.f32 %v356_v6, %v197_v17 }
  0x14   : > { %v210_v26 = vadd.f32 %v356_v6, %v198_v18  ;;  %v211_v27 = vadd.f32 %v356_v6, %v199_v19  ;;  %v212_v28 = vadd.f32 %v356_v6, %v200_v20  ;;  %v213_v29 = vadd.f32 %v356_v6, %v201_v21 }
  0x15   : > { %v214_v30 = vmax.f32 %v206_v22, 0.0  ;;  %v215_v31 = vmax.f32 %v207_v23, 0.0  ;;  %v216_v32 = vmax.f32 %v208_v24, 0.0  ;;  %v217_v33 = vmax.f32 %v209_v25, 0.0 }
  0x16   : > { %v218_v34 = vmax.f32 %v210_v26, 0.0  ;;  %v219_v35 = vmax.f32 %v211_v27, 0.0  ;;  %v220_v36 = vmax.f32 %v212_v28, 0.0  ;;  %v221_v37 = vmax.f32 %v213_v29, 0.0 }
  0x17   : > { %v324_v38 = vpack.c.bf16 %v215_v31, %v214_v30  ;;  %v329_v39 = vpack.c.bf16 %v217_v33, %v216_v32 }
  0x18   : > { %v334_v40 = vpack.c.bf16 %v219_v35, %v218_v34  ;;  %v339_v41 = vpack.c.bf16 %v221_v37, %v220_v36 }
  0x19   : > { %325 = vst [vmem:[%s172_s25] sm:$0xff] %v324_v38  }
  0x1a   : > { %344 = vst [vmem:[%s172_s25 + $0x8] sm:$0xff] %v329_v39  }
  0x1b   : > { %345 = vst [vmem:[%s172_s25 + $0x10] sm:$0xff] %v334_v40  }
  0x1c   : > { %346 = vst [vmem:[%s172_s25 + $0x18] sm:$0xff] %v339_v41  }
  0x1d PF: > { %s13_s12 = sadd.s32 1, %s363_s12  }
  0x1e   : > { %p10_p4 = scmp.ge.s32.totalorder %s13_s12, 4  }
  0x20   :  { %12 = sbr.rel (!%p10_p4) target bundleno = 1 (0x1), region = 62 }

// kernel: basic_block_forward.8
= control target key start
LH: loop header
LB: loop body
LE: loop exit
PB: predicated region body
PF: predicated region fallthrough
CT: control target
= control target key end

     0   :  { %s614_s12 = smov 0   ;;  %s666_s0 = inlined_call_operand.vmem [shape: bf16[128,128], index: 0, kind: input, shape index: {}]   ;;  %s667_s1 = inlined_call_operand.vmem [shape: bf16[128,128], index: 1, kind: input, shape index: {}]   ;;  %s668_s2 = inlined_call_operand.vmem [shape: bf16[128,128], index: 2, kind: output, shape index: {0}]   ;;  %s669_s3 = inlined_call_operand.vmem [shape: f32[2,2,128], index: 3, kind: output, shape index: {1}]  }
   0x1 LB: > { %s620_s13 = sadd.s32 4294967295, %s592_s12   ;;  %p463_p0 = scmp.ge.s32.totalorder %s592_s12, 1  ;;  %s592_s12 = sphi %s614_s12, %s14_s12  }
   0x2   : > { %p141_p1 = scmp.lt.s32.totalorder %s592_s12, 3 }
   0x4   : > { %p142_p2 = pnand %p463_p0, %p141_p1 }
   0x5   : > { %s464_s22 = sshll.u32 (!%p142_p2), %s620_s13, 3  ;;  %p181_p4 = scmp.lt.s32.totalorder (!%p142_p2), %s620_s13, 1 }
   0x6   : > { %145 = sbr.rel (%p142_p2) target bundleno = 237 (0xed), region = 28  ;;  %p170_p3 = scmp.lt.s32.totalorder (!%p142_p2), %s464_s22, 15 }
   0xb   : > { %v530_v0 = vld [vmem:[%s667_s1 + $0x38] sm:$0xff]  ;;  %v529_v1 = vld [vmem:[%s667_s1 + $0x30] sm:$0xff]  ;;  %v528_v2 = vld [vmem:[%s667_s1 + $0x28] sm:$0xff]  ;;  %s671_s22 = smov (!%p170_p3, %s464_s22), 15  ;;  %s673_s13 = smov (!%p181_p4, %s620_s13), 1  ;;  %vm369_vm0 = vcmask 1040384  }
   0xc   : > { %281 = vmatpush.bf16.msra.mxu0 %v530_v0  ;;  %554 = vmatpush.bf16.msra.mxu1 %v530_v0  ;;  %v527_v3 = vld [vmem:[%s667_s1 + $0x20] sm:$0xff]  ;;  %v526_v4 = vld [vmem:[%s667_s1 + $0x18] sm:$0xff]  ;;  %v525_v5 = vld [vmem:[%s667_s1 + $0x10] sm:$0xff]  ;;  %s465_s29 = sshll.u32 %s671_s22, 2  ;;  %s468_s11 = sshll.u32 %s673_s13, 1 }
   0xd   : > { %555 = vmatpush.bf16.msra.mxu2 %v530_v0  ;;  %556 = vmatpush.bf16.msra.mxu3 %v530_v0  ;;  %v524_v6 = vld [vmem:[%s667_s1 + $0x8] sm:$0xff]  ;;  %v523_v7 = vld [vmem:[%s667_s1] sm:$0xff]  ;;  %s173_s7 = scalar_lea.vmem %s666_s0, %s465_s29  ;;  %s179_s10 = scalar_lea.vmem %s668_s2, %s465_s29 }
   0xe   : > { %v519_v8 = vld [vmem:[%s173_s7] sm:$0xff]  ;;  %v520_v9 = vld [vmem:[%s173_s7 + $0x8] sm:$0xff]  ;;  %v521_v10 = vld [vmem:[%s173_s7 + $0x10] sm:$0xff]  ;;  %s184_s16 = scalar_lea.vmem %s669_s3, %s468_s11 }
   0xf   : > { %v522_v11 = vld [vmem:[%s173_s7 + $0x18] sm:$0xff] }
  0x10   : > { %282 = vmatpush.bf16.msra.mxu0 %v529_v1  ;;  %557 = vmatpush.bf16.msra.mxu1 %v529_v1 }
  0x11   : > { %558 = vmatpush.bf16.msra.mxu2 %v529_v1  ;;  %559 = vmatpush.bf16.msra.mxu3 %v529_v1 }
  0x14   : > { %283 = vmatpush.bf16.msra.mxu0 %v528_v2  ;;  %560 = vmatpush.bf16.msra.mxu1 %v528_v2 }
  0x15   : > { %561 = vmatpush.bf16.msra.mxu2 %v528_v2  ;;  %562 = vmatpush.bf16.msra.mxu3 %v528_v2 }
  0x18   : > { %284 = vmatpush.bf16.msra.mxu0 %v527_v3  ;;  %563 = vmatpush.bf16.msra.mxu1 %v527_v3 }
  0x19   : > { %564 = vmatpush.bf16.msra.mxu2 %v527_v3  ;;  %565 = vmatpush.bf16.msra.mxu3 %v527_v3 }
  0x1c   : > { %285 = vmatpush.bf16.msra.mxu0 %v526_v4  ;;  %566 = vmatpush.bf16.msra.mxu1 %v526_v4 }
  0x1d   : > { %567 = vmatpush.bf16.msra.mxu2 %v526_v4  ;;  %568 = vmatpush.bf16.msra.mxu3 %v526_v4 }
  0x20   : > { %286 = vmatpush.bf16.msra.mxu0 %v525_v5  ;;  %569 = vmatpush.bf16.msra.mxu1 %v525_v5 }
  0x21   : > { %570 = vmatpush.bf16.msra.mxu2 %v525_v5  ;;  %571 = vmatpush.bf16.msra.mxu3 %v525_v5 }
  0x24   : > { %287 = vmatpush.bf16.msra.mxu0 %v524_v6  ;;  %572 = vmatpush.bf16.msra.mxu1 %v524_v6 }
  0x25   : > { %573 = vmatpush.bf16.msra.mxu2 %v524_v6  ;;  %574 = vmatpush.bf16.msra.mxu3 %v524_v6 }
  0x28   : > { %288 = vmatpush.bf16.msra.mxu0 %v523_v7  ;;  %575 = vmatpush.bf16.msra.mxu1 %v523_v7 }
  0x29   : > { %576 = vmatpush.bf16.msra.mxu2 %v523_v7  ;;  %577 = vmatpush.bf16.msra.mxu3 %v523_v7 }
  0x2b   : > { %289 = vmatmul.bf16.vlgmr.msra.gmra.mxu0 %v519_v8  ;;  %294 = vmatmul.bf16.vlgmr.msra.gmra.mxu1 %v520_v9 }
  0x2c   : > { %299 = vmatmul.bf16.vlgmr.msra.gmra.mxu2 %v521_v10  ;;  %304 = vmatmul.bf16.vlgmr.msra.gmra.mxu3 %v522_v11 }
  0xa8   : > { %v290_v12 = vpop.f32.mrf.mxu0  ;;  %v295_v13 = vpop.f32.mrf.mxu1 }
  0xaf   : > { %v300_v14 = vpop.f32.mrf.mxu2  ;;  %v305_v15 = vpop.f32.mrf.mxu3 }
  0xb0   : > { %v292_v16 = vpop.f32.mrf.mxu0  ;;  %v297_v17 = vpop.f32.mrf.mxu1 }
  0xb1   : > { %v310_v18 = vadd.f32 %v292_v16, %v290_v12  ;;  %v534_v19 = vpack.c.bf16 %v292_v16, %v290_v12  ;;  %v539_v20 = vpack.c.bf16 %v297_v17, %v295_v13 }
  0xb3   : > { %535 = vst [vmem:[%s179_s10] sm:$0xff] %v534_v19   ;;  %v311_v21 = vadd.f32 %v310_v18, %v295_v13 }
  0xb4   : > { %551 = vst [vmem:[%s179_s10 + $0x8] sm:$0xff] %v539_v20  }
  0xb5   : > { %v312_v22 = vadd.f32 %v311_v21, %v297_v17 }
  0xb7   : > { %v302_v23 = vpop.f32.mrf.mxu2  ;;  %v313_v24 = vadd.f32 %v312_v22, %v300_v14  ;;  %v307_v25 = vpop.f32.mrf.mxu3 }
  0xb8   : > { %v544_v26 = vpack.c.bf16 %v302_v23, %v300_v14  ;;  %v549_v27 = vpack.c.bf16 %v307_v25, %v305_v15 }
  0xb9   : > { %v314_v28 = vadd.f32 %v313_v24, %v302_v23 }
  0xba   : > { %552 = vst [vmem:[%s179_s10 + $0x10] sm:$0xff] %v544_v26  }
  0xbb   : > { %v315_v29 = vadd.f32 %v314_v28, %v305_v15  ;;  %553 = vst [vmem:[%s179_s10 + $0x18] sm:$0xff] %v549_v27  }
  0xbd   : > { %v316_v30 = vadd.f32 %v315_v29, %v307_v25 }
  0xbf   : > { %v317_v31 = vrot.slane %v316_v30, 4 }
  0xc1   : > { %v318_v32 = vadd.f32 %v317_v31, %v316_v30 }
  0xc3   : > { %v319_v33 = vrot.slane %v318_v32, 2 }
  0xc5   : > { %v320_v34 = vadd.f32 %v319_v33, %v318_v32 }
  0xc7   : > { %v321_v35 = vrot.slane %v320_v34, 1 }
  0xc9   : > { %v322_v36 = vadd.f32 %v321_v35, %v320_v34 }
  0xcb   : > { %v323_v37 = vmul.f32 0.015625, %v322_v36 }
  0xcd   : > { %v324_v38 = vsub.f32 %v290_v12, %v323_v37  ;;  %v325_v39 = vsub.f32 %v292_v16, %v323_v37  ;;  %v326_v40 = vsub.f32 %v295_v13, %v323_v37  ;;  %v327_v41 = vsub.f32 %v297_v17, %v323_v37 }
  0xce   : > { %v328_v44 = vsub.f32 %v300_v14, %v323_v37  ;;  %v329_v47 = vsub.f32 %v302_v23, %v323_v37  ;;  %v330_v50 = vsub.f32 %v305_v15, %v323_v37  ;;  %v331_v53 = vsub.f32 %v307_v25, %v323_v37 }
  0xcf   : > { %v332_v42 = vmul.f32 %v324_v38, %v324_v38  ;;  %v333_v43 = vmul.f32 %v325_v39, %v325_v39  ;;  %v334_v45 = vmul.f32 %v326_v40, %v326_v40  ;;  %v335_v48 = vmul.f32 %v327_v41, %v327_v41 }
  0xd0   : > { %v336_v51 = vmul.f32 %v328_v44, %v328_v44  ;;  %v337_v54 = vmul.f32 %v329_v47, %v329_v47  ;;  %v338_v56 = vmul.f32 %v330_v50, %v330_v50  ;;  %v339_v58 = vmul.f32 %v331_v53, %v331_v53 }
  0xd1   : > { %v340_v46 = vadd.f32 %v333_v43, %v332_v42 }
  0xd3   : > { %v341_v49 = vadd.f32 %v340_v46, %v334_v45 }
  0xd5   : > { %v342_v52 = vadd.f32 %v341_v49, %v335_v48 }
  0xd7   : > { %v343_v55 = vadd.f32 %v342_v52, %v336_v51 }
  0xd9   : > { %v344_v57 = vadd.f32 %v343_v55, %v337_v54 }
  0xdb   : > { %v345_v59 = vadd.f32 %v344_v57, %v338_v56 }
  0xdd   : > { %v346_v60 = vadd.f32 %v345_v59, %v339_v58 }
  0xdf   : > { %v347_v61 = vrot.slane %v346_v60, 4 }
  0xe1   : > { %v348_v62 = vadd.f32 %v347_v61, %v346_v60 }
  0xe3   : > { %v349_v63 = vrot.slane %v348_v62, 2 }
  0xe5   : > { %v350_v0 = vadd.f32 %v349_v63, %v348_v62 }
  0xe7   : > { %v351_v1 = vrot.slane %v350_v0, 1 }
  0xe9   : > { %v352_v2 = vadd.f32 %v351_v1, %v350_v0 }
  0xeb   : > { %v370_v3 = vsel %vm369_vm0, %v322_v36, %v352_v2 }
  0xec   : > { %371 = vst [vmem:[%s184_s16] sm:$0x3] %v370_v3 }
  0xed PF: > { %s14_s12 = sadd.s32 1, %s592_s12  }
  0xee   : > { %p11_p5 = scmp.ge.s32.totalorder %s14_s12, 4  }
  0xf0   :  { %13 = sbr.rel (!%p11_p5) target bundleno = 1 (0x1), region = 70 }

// kernel: basic_block_forward.11
= control target key start
LH: loop header
LB: loop body
LE: loop exit
PB: predicated region body
PF: predicated region fallthrough
CT: control target
= control target key end

     0   :  { %s465_s15 = smov 0   ;;  %s495_s0 = inlined_call_operand.vmem [shape: bf16[128,128], index: 0, kind: input, shape index: {}]   ;;  %s496_s1 = inlined_call_operand.vmem [shape: f32[1,128], index: 1, kind: input, shape index: {}]   ;;  %s497_s2 = inlined_call_operand.vmem [shape: f32[1,128], index: 2, kind: input, shape index: {}]   ;;  %s498_s3 = inlined_call_operand.vmem [shape: bf16[128,128], index: 3, kind: input, shape index: {}]   ;;  %s499_s4 = inlined_call_operand.vmem [shape: f32[128,128], index: 4, kind: output, shape index: {}]  }
   0x1 LB: > { %s371_s16 = sadd.s32 4294967295, %s438_s15   ;;  %p375_p0 = scmp.ge.s32.totalorder %s438_s15, 1  ;;  %s438_s15 = sphi %s465_s15, %s14_s15  }
   0x2   : > { %p174_p1 = scmp.lt.s32.totalorder %s438_s15, 3 }
   0x4   : > { %p175_p2 = pnand %p375_p0, %p174_p1 }
   0x5   : > { %s376_s17 = sshll.u32 (!%p175_p2), %s371_s16, 3 }
   0x6   : > { %178 = sbr.rel (%p175_p2) target bundleno = 33 (0x21), region = 36  ;;  %p206_p3 = scmp.lt.s32.totalorder (!%p175_p2), %s376_s17, 15 }
   0xb   : > { %s501_s17 = smov (!%p206_p3, %s376_s17), 15  ;;  %v430_v0 = vld [vmem:[%s496_s1] ss:$0 sm:$0xff] }
   0xc   : > { %s377_s18 = sshll.u32 %s501_s17, 2  ;;  %v431_v1 = vld [vmem:[%s497_s2] ss:$0 sm:$0xff]  ;;  %s381_s29 = sshll.u32 %s501_s17, 3 }
   0xd   : > { %s209_s21 = scalar_lea.vmem %s495_s0, %s377_s18  ;;  %s215_s24 = scalar_lea.vmem %s498_s3, %s377_s18 }
   0xe   : > { %v385_v2 = vld [vmem:[%s209_s21] sm:$0xff]   ;;  %v416_v4 = vld [vmem:[%s209_s21 + $0x8] sm:$0xff]   ;;  %v417_v10 = vld [vmem:[%s209_s21 + $0x10] sm:$0xff]   ;;  %s221_s6 = scalar_lea.vmem %s499_s4, %s381_s29 }
   0xf   : > { %v401_v3 = vld [vmem:[%s215_s24] sm:$0xff]   ;;  %v386_v5 = vunpack.c.l.bf16 %v385_v2  ;;  %v387_v7 = vunpack.c.h.bf16 %v385_v2  ;;  %v419_v9 = vld [vmem:[%s215_s24 + $0x8] sm:$0xff]   ;;  %v420_v11 = vld [vmem:[%s215_s24 + $0x10] sm:$0xff]   ;;  %v390_v12 = vunpack.c.l.bf16 %v416_v4  ;;  %v391_v14 = vunpack.c.h.bf16 %v416_v4 }
  0x10   : > { %v402_v6 = vunpack.c.l.bf16 %v401_v3  ;;  %v403_v8 = vunpack.c.h.bf16 %v401_v3  ;;  %v406_v13 = vunpack.c.l.bf16 %v419_v9  ;;  %v407_v15 = vunpack.c.h.bf16 %v419_v9  ;;  %v418_v16 = vld [vmem:[%s209_s21 + $0x18] sm:$0xff]  }
  0x11   : > { %v243_v17 = vmul.f32 %v430_v0, %v386_v5  ;;  %v244_v18 = vmul.f32 %v430_v0, %v387_v7  ;;  %v394_v19 = vunpack.c.l.bf16 %v417_v10  ;;  %v410_v20 = vunpack.c.l.bf16 %v420_v11  ;;  %v421_v21 = vld [vmem:[%s215_s24 + $0x18] sm:$0xff]  }
  0x12   : > { %v245_v22 = vmul.f32 %v430_v0, %v390_v12  ;;  %v246_v23 = vmul.f32 %v430_v0, %v391_v14  ;;  %v395_v24 = vunpack.c.h.bf16 %v417_v10  ;;  %v411_v25 = vunpack.c.h.bf16 %v420_v11 }
  0x13   : > { %v255_v26 = vadd.f32 %v431_v1, %v243_v17  ;;  %v256_v27 = vadd.f32 %v431_v1, %v244_v18  ;;  %v247_v28 = vmul.f32 %v430_v0, %v394_v19  ;;  %v398_v29 = vunpack.c.l.bf16 %v418_v16 }
  0x14   : > { %v257_v30 = vadd.f32 %v431_v1, %v245_v22  ;;  %v258_v31 = vadd.f32 %v431_v1, %v246_v23  ;;  %v248_v32 = vmul.f32 %v430_v0, %v395_v24  ;;  %v414_v33 = vunpack.c.l.bf16 %v421_v21 }
  0x15   : > { %v279_v34 = vadd.f32 %v402_v6, %v255_v26  ;;  %v280_v35 = vadd.f32 %v403_v8, %v256_v27  ;;  %v259_v36 = vadd.f32 %v431_v1, %v247_v28  ;;  %v249_v37 = vmul.f32 %v430_v0, %v398_v29 }
  0x16   : > { %v281_v38 = vadd.f32 %v406_v13, %v257_v30  ;;  %v282_v39 = vadd.f32 %v407_v15, %v258_v31  ;;  %v260_v40 = vadd.f32 %v431_v1, %v248_v32  ;;  %v399_v41 = vunpack.c.h.bf16 %v418_v16 }
  0x17   : > { %v287_v42 = vmax.f32 %v279_v34, 0.0  ;;  %v288_v43 = vmax.f32 %v280_v35, 0.0  ;;  %v283_v44 = vadd.f32 %v410_v20, %v259_v36  ;;  %v261_v45 = vadd.f32 %v431_v1, %v249_v37 }
  0x18   : > { %v289_v46 = vmax.f32 %v281_v38, 0.0  ;;  %v290_v47 = vmax.f32 %v282_v39, 0.0  ;;  %v284_v48 = vadd.f32 %v411_v25, %v260_v40  ;;  %v250_v49 = vmul.f32 %v430_v0, %v399_v41 }
  0x19   : > { %295 = vst [vmem:[%s221_s6] sm:$0xff] %v287_v42  ;;  %v291_v50 = vmax.f32 %v283_v44, 0.0  ;;  %v285_v51 = vadd.f32 %v414_v33, %v261_v45  ;;  %v415_v52 = vunpack.c.h.bf16 %v421_v21 }
  0x1a   : > { %296 = vst [vmem:[%s221_s6 + $0x8] sm:$0xff] %v288_v43  ;;  %v292_v53 = vmax.f32 %v284_v48, 0.0  ;;  %v262_v54 = vadd.f32 %v431_v1, %v250_v49 }
  0x1b   : > { %297 = vst [vmem:[%s221_s6 + $0x10] sm:$0xff] %v289_v46  ;;  %v293_v55 = vmax.f32 %v285_v51, 0.0 }
  0x1c   : > { %298 = vst [vmem:[%s221_s6 + $0x18] sm:$0xff] %v290_v47  ;;  %v286_v56 = vadd.f32 %v415_v52, %v262_v54 }
  0x1d   : > { %299 = vst [vmem:[%s221_s6 + $0x20] sm:$0xff] %v291_v50 }
  0x1e   : > { %300 = vst [vmem:[%s221_s6 + $0x28] sm:$0xff] %v292_v53  ;;  %v294_v57 = vmax.f32 %v286_v56, 0.0 }
  0x1f   : > { %301 = vst [vmem:[%s221_s6 + $0x30] sm:$0xff] %v293_v55 }
  0x20   : > { %302 = vst [vmem:[%s221_s6 + $0x38] sm:$0xff] %v294_v57 }
  0x21 PF: > { %s14_s15 = sadd.s32 1, %s438_s15  }
  0x22   : > { %p11_p4 = scmp.ge.s32.totalorder %s14_s15, 4  }
  0x24   :  { %13 = sbr.rel (!%p11_p4) target bundleno = 1 (0x1), region = 69 }

// kernel: basic_block_forward.7
= control target key start
LH: loop header
LB: loop body
LE: loop exit
PB: predicated region body
PF: predicated region fallthrough
CT: control target
= control target key end

     0   :  { %s377_s12 = smov 0   ;;  %s403_s0 = inlined_call_operand.vmem [shape: bf16[128,128], index: 0, kind: input, shape index: {}]   ;;  %s404_s1 = inlined_call_operand.vmem [shape: f32[1,128], index: 1, kind: input, shape index: {}]   ;;  %s405_s2 = inlined_call_operand.vmem [shape: f32[1,128], index: 2, kind: input, shape index: {}]   ;;  %s406_s3 = inlined_call_operand.vmem [shape: bf16[128,128], index: 3, kind: output, shape index: {}]  }
   0x1 LB: > { %s286_s13 = sadd.s32 4294967295, %s355_s12   ;;  %p290_p0 = scmp.ge.s32.totalorder %s355_s12, 1  ;;  %s355_s12 = sphi %s377_s12, %s13_s12  }
   0x2   : > { %p138_p1 = scmp.lt.s32.totalorder %s355_s12, 3 }
   0x4   : > { %p139_p2 = pnand %p290_p0, %p138_p1 }
   0x5   : > { %s291_s14 = sshll.u32 (!%p139_p2), %s286_s13, 3 }
   0x6   : > { %142 = sbr.rel (%p139_p2) target bundleno = 27 (0x1b), region = 32  ;;  %p163_p3 = scmp.lt.s32.totalorder (!%p139_p2), %s291_s14, 15 }
   0xb   : > { %s408_s14 = smov (!%p163_p3, %s291_s14), 15  ;;  %v347_v0 = vld [vmem:[%s404_s1] ss:$0 sm:$0xff] }
   0xc   : > { %s292_s15 = sshll.u32 %s408_s14, 2  ;;  %v348_v6 = vld [vmem:[%s405_s2] ss:$0 sm:$0xff] }
   0xd   : > { %s166_s18 = scalar_lea.vmem %s403_s0, %s292_s15  ;;  %s172_s25 = scalar_lea.vmem %s406_s3, %s292_s15 }
   0xe   : > { %v298_v1 = vld [vmem:[%s166_s18] sm:$0xff]   ;;  %v333_v2 = vld [vmem:[%s166_s18 + $0x8] sm:$0xff]   ;;  %v334_v3 = vld [vmem:[%s166_s18 + $0x10] sm:$0xff]  }
   0xf   : > { %v299_v4 = vunpack.c.l.bf16 %v298_v1  ;;  %v300_v5 = vunpack.c.h.bf16 %v298_v1  ;;  %v303_v7 = vunpack.c.l.bf16 %v333_v2  ;;  %v304_v8 = vunpack.c.h.bf16 %v333_v2  ;;  %v335_v9 = vld [vmem:[%s166_s18 + $0x18] sm:$0xff]  }
  0x10   : > { %v307_v10 = vunpack.c.l.bf16 %v334_v3  ;;  %v308_v11 = vunpack.c.h.bf16 %v334_v3  ;;  %v311_v12 = vunpack.c.l.bf16 %v335_v9  ;;  %v312_v13 = vunpack.c.h.bf16 %v335_v9 }
  0x11   : > { %v194_v14 = vmul.f32 %v347_v0, %v299_v4  ;;  %v195_v15 = vmul.f32 %v347_v0, %v300_v5  ;;  %v196_v16 = vmul.f32 %v347_v0, %v303_v7  ;;  %v197_v17 = vmul.f32 %v347_v0, %v304_v8 }
  0x12   : > { %v198_v18 = vmul.f32 %v347_v0, %v307_v10  ;;  %v199_v19 = vmul.f32 %v347_v0, %v308_v11  ;;  %v200_v20 = vmul.f32 %v347_v0, %v311_v12  ;;  %v201_v21 = vmul.f32 %v347_v0, %v312_v13 }
  0x13   : > { %v206_v22 = vadd.f32 %v348_v6, %v194_v14  ;;  %v207_v23 = vadd.f32 %v348_v6, %v195_v15  ;;  %v208_v24 = vadd.f32 %v348_v6, %v196_v16  ;;  %v209_v25 = vadd.f32 %v348_v6, %v197_v17 }
  0x14   : > { %v210_v26 = vadd.f32 %v348_v6, %v198_v18  ;;  %v211_v27 = vadd.f32 %v348_v6, %v199_v19  ;;  %v212_v28 = vadd.f32 %v348_v6, %v200_v20  ;;  %v213_v29 = vadd.f32 %v348_v6, %v201_v21 }
  0x15   : > { %v316_v30 = vpack.c.bf16 %v207_v23, %v206_v22  ;;  %v321_v31 = vpack.c.bf16 %v209_v25, %v208_v24 }
  0x16   : > { %v326_v32 = vpack.c.bf16 %v211_v27, %v210_v26  ;;  %v331_v33 = vpack.c.bf16 %v213_v29, %v212_v28 }
  0x17   : > { %317 = vst [vmem:[%s172_s25] sm:$0xff] %v316_v30  }
  0x18   : > { %336 = vst [vmem:[%s172_s25 + $0x8] sm:$0xff] %v321_v31  }
  0x19   : > { %337 = vst [vmem:[%s172_s25 + $0x10] sm:$0xff] %v326_v32  }
  0x1a   : > { %338 = vst [vmem:[%s172_s25 + $0x18] sm:$0xff] %v331_v33  }
  0x1b PF: > { %s13_s12 = sadd.s32 1, %s355_s12  }
  0x1c   : > { %p10_p4 = scmp.ge.s32.totalorder %s13_s12, 4  }
  0x1e   :  { %12 = sbr.rel (!%p10_p4) target bundleno = 1 (0x1), region = 62 }

</bundles_post_ra>
